<compile_context>
chip_gen: v7x
topology: tpu7x:2x2x1
jax: 0.10.0
libtpu: 0.0.40
codegen_flags: <defaults>
</compile_context>

<pallas_src>
import jax
import jax.numpy as jnp
from jax.experimental import pallas as pl
from jax.experimental.pallas import tpu as pltpu


def _memsum_kernel(x_ref, m_ref, s_ref):
    """Accumulate s[c] = sum_{n, p} (2*m[n,p]-1) * x[n,c,p] over HW tiles.

    x_ref: (N, C, T) f32 memory-frame features, channels-major, lane-dense HW
    m_ref: (N, T)    f32 raw {0,1} masks
    s_ref: (C, 1)    f32 output accumulator (resident across the grid)
    """
    @pl.when(pl.program_id(0) == 0)
    def _():
        s_ref[...] = jnp.zeros_like(s_ref)

    mw = m_ref[...] * 2.0 - 1.0                       # (N, T), {0,1} -> {-1,+1}
    xm = x_ref[...] * mw[:, None, :]                  # (N, C, T)  VPU
    sx = jnp.sum(xm, axis=0)                          # (C, T)     cross-slab add
    s_ref[...] += jnp.sum(sx, axis=1, keepdims=True)  # (C, 1)     lane reduce


def _target_kernel(u_ref, t_ref, o_ref):
    """logits[q] = sum_c u[c] * t[c, q] for one HW tile.

    u_ref: (C, 1) f32 folded projection vector (resident)
    t_ref: (C, T) f32 target frame tile
    o_ref: (1, T) f32 logits tile (lane-dense output)
    """
    o_ref[...] = jnp.sum(u_ref[...] * t_ref[...], axis=0, keepdims=True)


def propagate(target, images, masks, w_enc, *, tile_hw=512):
    """target: (C, H, W)  images: (N, C, H, W)  masks: (N, H, W) {0,1}  w_enc: (C, D)."""
    C, H, W = target.shape
    N = images.shape[0]
    HW = H * W
    D = w_enc.shape[1]
    scale = 1.0 / (D ** 0.5)

    # Channels-major, lane-dense-HW operands; pure reshapes, no casts/copies.
    t2 = target.reshape(C, HW)                          # (C, HW)   f32
    x3 = images.reshape(N, C, HW)                       # (N, C, HW) f32
    m2 = masks.reshape(N, HW).astype(jnp.float32)       # (N, HW)   raw {0,1}

    # HW tile: >=128 lanes, divides HW; fall back to full HW for odd sizes.
    if tile_hw <= HW and HW % tile_hw == 0 and tile_hw % 128 == 0:
        tile = tile_hw
    else:
        tile = HW
    grid = (HW // tile,)

    # ---- Pass 1: masked-memory reduction to a (C, 1) vector. ------------
    s = pl.pallas_call(
        _memsum_kernel,
        out_shape=jax.ShapeDtypeStruct((C, 1), jnp.float32),
        grid_spec=pltpu.PrefetchScalarGridSpec(
            num_scalar_prefetch=0,
            grid=grid,
            in_specs=[
                pl.BlockSpec((N, C, tile), lambda i: (0, 0, i)),
                pl.BlockSpec((N, tile), lambda i: (0, i)),
            ],
            out_specs=pl.BlockSpec((C, 1), lambda i: (0, 0)),
        ),
        compiler_params=pltpu.CompilerParams(
            dimension_semantics=("arbitrary",),   # reduction axis
        ),
    )(x3, m2)

    # ---- Folded encoder projections (tiny: O(C*D) flops). ----------------
    u = (scale * (w_enc @ (w_enc.T @ s))).astype(jnp.float32)   # (C, 1)

    # ---- Pass 2: logits[q] = sum_c u[c] * t[c, q], tiled over HW. --------
    logit_flat = pl.pallas_call(
        _target_kernel,
        out_shape=jax.ShapeDtypeStruct((1, HW), jnp.float32),
        grid_spec=pltpu.PrefetchScalarGridSpec(
            num_scalar_prefetch=0,
            grid=grid,
            in_specs=[
                pl.BlockSpec((C, 1), lambda i: (0, 0)),
                pl.BlockSpec((C, tile), lambda i: (0, i)),
            ],
            out_specs=pl.BlockSpec((1, tile), lambda i: (0, i)),
        ),
        compiler_params=pltpu.CompilerParams(
            dimension_semantics=("parallel",),    # independent tiles -> 2 TCs on v7x
        ),
    )(u, t2)

    mask_logit = logit_flat.reshape(1, 1, H, W)    # matches SAM2 (obj, 1, H, W)
    mask = mask_logit > 0.0                        # threshold in wrapper (free)
    return mask, mask_logit


if __name__ == "__main__":
    key = jax.random.PRNGKey(0)
    k_t, k_img, k_msk, k_w = jax.random.split(key, 4)

    N_mem, C, H, W, D = 2, 4, 16, 16, 32

    # retrieval = {'image': [2 frames], 'mask': [2 masks]}, plus one target frame
    target = jax.random.normal(k_t, (C, H, W), dtype=jnp.float32)
    retrieval_image = jax.random.normal(k_img, (N_mem, C, H, W), dtype=jnp.float32)
    retrieval_mask = (jax.random.uniform(k_msk, (N_mem, H, W)) > 0.5).astype(jnp.float32)

    # Deterministic synthetic "encoder" weights (no checkpoint loading).
    w_enc = 0.1 * jax.random.normal(k_w, (C, D), dtype=jnp.float32)

    # tile_hw=128 at this small HW (=256) exercises the multi-tile
    # accumulate/finalize path (grid of 2 per pass).
    mask, mask_logit = propagate(target, retrieval_image, retrieval_mask, w_enc,
                                 tile_hw=128)
    jax.block_until_ready((mask, mask_logit))

    assert mask.shape == (1, 1, H, W) and mask.dtype == jnp.bool_
    assert mask_logit.shape == (1, 1, H, W) and mask_logit.dtype == jnp.float32
    assert bool(jnp.all(mask == (mask_logit > 0.0)))

    # Pure-JAX reference of the ORIGINAL (un-reassociated) affinity math, f32
    # end-to-end -> tight tolerance.
    HW = H * W
    t_f = target.reshape(C, HW)
    x_f = retrieval_image.reshape(N_mem, C, HW)
    m_f = retrieval_mask.reshape(N_mem, HW) * 2.0 - 1.0            # (N, HW)
    ft_r = jnp.einsum("cq,cd->qd", t_f, w_enc)                     # (HW, D)
    fm_r = jnp.einsum("ncp,cd->npd", x_f, w_enc)                   # (N, HW, D)
    aff_r = jnp.einsum("npd,qd->npq", fm_r, ft_r)                  # (N, HW, HW)
    logit_r = (1.0 / (D ** 0.5)) * jnp.einsum("np,npq->q", m_f, aff_r)
    assert bool(jnp.allclose(mask_logit.reshape(-1), logit_r, rtol=1e-3, atol=1e-3))

    print("KERNEL_OK")
</pallas_src>

<mosaic_0001>
module attributes {stable_mosaic.version = 11 : i64} {
  func.func @_memsum_kernel(%arg0: i32, %arg1: memref<2x4x128xf32, #tpu.memory_space<vmem>>, %arg2: memref<2x128xf32, #tpu.memory_space<vmem>>, %arg3: memref<4x1xf32, #tpu.memory_space<vmem>>) attributes {dimension_semantics = [#tpu.dimension_semantics<arbitrary>], iteration_bounds = array<i64: 2>, scalar_prefetch = 0 : i64, scratch_operands = 0 : i64, tpu.core_type = #tpu.core_type<tc>, window_params = [{transform_indices = @transform_0, window_bounds = array<i64: 2, 4, 128>}, {transform_indices = @transform_1, window_bounds = array<i64: 2, 128>}, {pipeline_mode = #tpu.pipeline_mode<synchronous>, transform_indices = @transform_2, window_bounds = array<i64: 4, 1>}]} {
    %c0_i32 = arith.constant 0 : i32
    %0 = arith.cmpi eq, %arg0, %c0_i32 : i32
    %1 = arith.extui %0 : i1 to i32
    %c0_i32_0 = arith.constant 0 : i32
    %2 = arith.cmpi ne, %1, %c0_i32_0 : i32
    scf.if %2 {
      %cst_12 = arith.constant 0.000000e+00 : f32
      %18 = vector.broadcast %cst_12 : f32 to vector<4x1xf32>
      %c0_13 = arith.constant 0 : index
      %c0_14 = arith.constant 0 : index
      %19 = vector.load %arg3[%c0_13, %c0_14] : memref<4x1xf32, #tpu.memory_space<vmem>>, vector<4x1xf32>
      tpu.vector_store %arg3[%c0_13, %c0_14], %18 {strides = array<i32>} : memref<4x1xf32, #tpu.memory_space<vmem>>, vector<4x1xf32>,
    } else {
    }
    %c0 = arith.constant 0 : index
    %c0_1 = arith.constant 0 : index
    %3 = vector.load %arg2[%c0, %c0_1] : memref<2x128xf32, #tpu.memory_space<vmem>>, vector<2x128xf32>
    %cst = arith.constant 2.000000e+00 : f32
    %4 = vector.broadcast %cst : f32 to vector<2x128xf32>
    %5 = arith.mulf %3, %4 : vector<2x128xf32>
    %cst_2 = arith.constant 1.000000e+00 : f32
    %6 = vector.broadcast %cst_2 : f32 to vector<2x128xf32>
    %7 = arith.subf %5, %6 : vector<2x128xf32>
    %c0_3 = arith.constant 0 : index
    %c0_4 = arith.constant 0 : index
    %c0_5 = arith.constant 0 : index
    %8 = vector.load %arg1[%c0_3, %c0_4, %c0_5] : memref<2x4x128xf32, #tpu.memory_space<vmem>>, vector<2x4x128xf32>
    %9 = vector.shape_cast %7 : vector<2x128xf32> to vector<2x1x128xf32>
    %10 = vector.broadcast %9 : vector<2x1x128xf32> to vector<2x4x128xf32>
    %11 = arith.mulf %8, %10 : vector<2x4x128xf32>
    %cst_6 = arith.constant dense<0.000000e+00> : vector<4x128xf32>
    %12 = vector.multi_reduction <add>, %11, %cst_6 [0] : vector<2x4x128xf32> to vector<4x128xf32>
    %c0_7 = arith.constant 0 : index
    %c0_8 = arith.constant 0 : index
    %13 = vector.load %arg3[%c0_7, %c0_8] : memref<4x1xf32, #tpu.memory_space<vmem>>, vector<4x1xf32>
    %cst_9 = arith.constant dense<0.000000e+00> : vector<4xf32>
    %14 = vector.multi_reduction <add>, %12, %cst_9 [1] : vector<4x128xf32> to vector<4xf32>
    %15 = vector.shape_cast %14 : vector<4xf32> to vector<4x1xf32>
    %16 = arith.addf %13, %15 : vector<4x1xf32>
    %c0_10 = arith.constant 0 : index
    %c0_11 = arith.constant 0 : index
    %17 = vector.load %arg3[%c0_10, %c0_11] : memref<4x1xf32, #tpu.memory_space<vmem>>, vector<4x1xf32>
    tpu.vector_store %arg3[%c0_10, %c0_11], %16 {strides = array<i32>} : memref<4x1xf32, #tpu.memory_space<vmem>>, vector<4x1xf32>,
    return
  }
  func.func @transform_0(%arg0: i32) -> (i32, i32, i32) {
    %c0_i32 = arith.constant 0 : i32
    %c0_i32_0 = arith.constant 0 : i32
    %c0_i32_1 = arith.constant 0 : i32
    return %c0_i32, %c0_i32_0, %arg0 : i32, i32, i32
  }
  func.func @transform_1(%arg0: i32) -> (i32, i32) {
    %c0_i32 = arith.constant 0 : i32
    %c0_i32_0 = arith.constant 0 : i32
    return %c0_i32, %arg0 : i32, i32
  }
  func.func @transform_2(%arg0: i32) -> (i32, i32) {
    %c0_i32 = arith.constant 0 : i32
    %c0_i32_0 = arith.constant 0 : i32
    %c0_i32_1 = arith.constant 0 : i32
    return %c0_i32, %c0_i32_0 : i32, i32
  }
}

</mosaic_0001>

<bundles_post_ra>
// kernel: tpu_custom_call.1
= control target key start
LH: loop header
LB: loop body
LE: loop exit
PB: predicated region body
PF: predicated region fallthrough
CT: control target
= control target key end

     0   :  { %7 = vsyncpa [#allocation3], 0  ;;  %s640_s0 = inlined_call_operand.hbm [shape: f32[2,4,256], index: 0, kind: input, shape index: {}]   ;;  %s641_s1 = inlined_call_operand.hbm [shape: f32[2,256], index: 1, kind: input, shape index: {}]   ;;  %s642_s2 = inlined_call_operand.vmem [shape: f32[4,1], index: 2, kind: output, shape index: {}]  }
   0x1   :  { %9 = vsyncpa [#allocation3 + $0x1], 0 }
   0x2   :  { %10 = vsyncpa [#allocation5], 0 }
   0x3   :  { %12 = vsyncpa [#allocation5 + $0x1], 0  ;;  %s489_s9 = smov 0   ;;  %s491_s10 = smov 0  }
   0x4   :  { %s493_s11 = smov 0   ;;  %s495_s12 = smov 0  }
   0x5 LB: > { %s304_s13 = sadd.s32 4294967295, %s465_s12   ;;  %s509_s14 = sadd.s32 1, %s465_s12   ;;  %s465_s12 = sphi %s495_s12, %s652_s12   ;;  %s461_s11 = sphi %s493_s11, %s651_s11   ;;  %s457_s10 = sphi %s491_s10, %s650_s10   ;;  %s453_s9 = sphi %s489_s9, %s649_s9  }
   0x6   : > { %s22_s15 = ssub.s32 %s465_s12, %s509_s14  ;;  %s25_s16 = sadd.s32 1, %s461_s11 }
   0x7   : > { %p23_p0 = scmp.eq.s32.totalorder %s22_s15, 0  ;;  %p32_p1 = scmp.ne.s32.totalorder %s461_s11, %s457_s10 }
   0x8   : > { %p33_p2 = scmp.eq.s32.totalorder %s465_s12, 0  ;;  %p38_p3 = scmp.ne.s32.totalorder %s457_s10, %s453_s9 }
   0x9   : > { %s519_s17 = scalar_select %p23_p0, %s461_s11, %s25_s16  }
   0xa   : > { %p34_p4 = por %p33_p2, %p32_p1  ;;  %p39_p5 = scmp.eq.s32.totalorder %s304_s13, 0 }
   0xb   : > { %p329_p6 = scmp.lt.s32.totalorder %s465_s12, 2  ;;  %s529_s19 = sand.u32 1, %s461_s11  }
   0xc   : > { %p524_p7 = por %p39_p5, %p38_p3  ;;  %s307_s20 = sshll.u32 %s529_s19, 3 }
   0xd   : > { %s308_s21 = sshll.u32 %s465_s12, 6  ;;  %s113_s25 = scalar_lea.vmem [#allocation2], %s307_s20 }
   0xe   : > { %s644_s18 = scalar_select %p524_p7, 1, 0 }
   0xf   : > { %s536_s24 = scalar_lea.hbm %s640_s0, %s308_s21  ;;  %s119_s26 = sshll.u32 %s113_s25, 4  ;;  %s538_s26 = int_to_ptr.vmem [resolvable:$true] %s119_s26 }
  0x10   : > { %p540_p8 = pnand %p329_p6, %p34_p4  ;;  %s110_s28 = scalar_lea.sflag [#allocation3], %s529_s19 }
  0x11   : > { %s367_s29 = scalar_lea.hbm %s536_s24, 128  ;;  %s372_s4 = scalar_lea.hbm %s640_s0, 256 }
  0x12   : > { %p368_p9 = scmp.ne.s32.totalorder %s536_s24, %s367_s29  ;;  %p369_p10 = pneg %p540_p8 }
  0x13   : > { %p373_p13 = scmp.lt.u32.totalorder %s536_s24, %s640_s0  ;;  %p374_p0 = scmp.lt.u32.totalorder %s372_s4, %s367_s29 }
  0x14   : > { %p370_p11 = pnand %p369_p10, %p368_p9  ;;  %p376_p2 = scmp.lt.u32.totalorder %s367_s29, %s536_s24 }
  0x15   : > { %p375_p1 = por %p374_p0, %p373_p13 }
  0x16   : > { %p371_p12 = pneg %p370_p11 }
  0x17   : > { %p377_p3 = por %p376_p2, %p375_p1 }
  0x19   : > { %p378_p4 = pnand %p377_p3, %p371_p12 }
  0x1b   : > { %381 = shalt.err (!%p378_p4)
}
  0x1c   : > { %s382_s7 = scalar_lea.vmem %s538_s26, 128  ;;  %s467_s8 = smov [#allocation2]  }
  0x1d   : > { %p383_p5 = scmp.ne.s32.totalorder %s538_s26, %s382_s7  ;;  %s387_s9 = sshll.u32 %s467_s8, 4  ;;  %s388_s9 = int_to_ptr.vmem [resolvable:$false] %s387_s9 }
  0x1e   : > { %s389_s15 = scalar_lea.vmem %s388_s9, 256  ;;  %p390_p11 = scmp.lt.s32.totalorder %s538_s26, %s388_s9 }
  0x1f   : > { %p385_p6 = pnand %p383_p5, %p369_p10  ;;  %p391_p13 = scmp.lt.s32.totalorder %s389_s15, %s382_s7 }
  0x21   : > { %p386_p9 = pneg %p385_p6  ;;  %p392_p0 = por %p391_p13, %p390_p11 }
  0x23   : > { %p393_p1 = pnand %p392_p0, %p386_p9 }
  0x25   : > { %396 = shalt.err (!%p393_p1)
}
  0x26   : > { %s468_s16 = smov 128   ;;  %s469_s20 = smov 64  }
  0x27   : > { %s470_s21 = smov 4   ;;  %p311_p12 = scmp.ge.s32.totalorder %s465_s12, 1 }
  0x28   : > { %325 = dma.hbm_to_vmem [thread:$0]  (!%p540_p8), %s536_s24, 128, %s538_s26, %s110_s28, %s468_s16, %s469_s20, %s470_s21  }
  0x29   : > { %p145_p2 = scmp.lt.s32.totalorder %s465_s12, 3  ;;  %s309_s22 = sshll.u32 %s529_s19, 1 }
  0x2a   : > { %s310_s25 = sshll.u32 %s465_s12, 5  ;;  %s133_s29 = scalar_lea.vmem [#allocation4], %s309_s22 }
  0x2b   : > { %p575_p3 = pnand %p311_p12, %p145_p2  ;;  %s140_s30 = sshll.u32 %s133_s29, 4  ;;  %s141_s30 = int_to_ptr.vmem [resolvable:$true] %s140_s30 }
  0x2c   : > { %s583_s5 = scalar_lea.hbm %s641_s1, %s310_s25  ;;  %s130_s24 = scalar_lea.sflag [#allocation5], %s529_s19 }
  0x2d   : > { %s646_s23 = scalar_select %p575_p3, 1, 0 }
  0x2e   : > { %s397_s26 = scalar_lea.hbm %s583_s5, 32  ;;  %s402_s7 = scalar_lea.hbm %s641_s1, 64 }
  0x2f   : > { %p398_p4 = scmp.ne.s32.totalorder %s583_s5, %s397_s26  ;;  %p403_p9 = scmp.lt.u32.totalorder %s583_s5, %s641_s1 }
  0x30   : > { %p404_p11 = scmp.lt.u32.totalorder %s402_s7, %s397_s26  ;;  %p406_p0 = scmp.lt.u32.totalorder %s397_s26, %s583_s5 }
  0x31   : > { %p400_p5 = pnand %p398_p4, %p369_p10 }
  0x32   : > { %p405_p13 = por %p404_p11, %p403_p9 }
  0x33   : > { %p401_p6 = pneg %p400_p5 }
  0x34   : > { %p407_p1 = por %p406_p0, %p405_p13 }
  0x36   : > { %p408_p12 = pnand %p407_p1, %p401_p6 }
  0x38   : > { %411 = shalt.err (!%p408_p12)
}
  0x39   : > { %s412_s19 = scalar_lea.vmem %s141_s30, 32  ;;  %s471_s15 = smov [#allocation4]  }
  0x3a   : > { %p413_p2 = scmp.ne.s32.totalorder %s141_s30, %s412_s19  ;;  %s417_s16 = sshll.u32 %s471_s15, 4  ;;  %s418_s16 = int_to_ptr.vmem [resolvable:$false] %s417_s16 }
  0x3b   : > { %s419_s20 = scalar_lea.vmem %s418_s16, 64  ;;  %p420_p7 = scmp.lt.s32.totalorder %s141_s30, %s418_s16 }
  0x3c   : > { %p415_p4 = pnand %p413_p2, %p369_p10  ;;  %p421_p3 = scmp.lt.s32.totalorder %s419_s20, %s412_s19 }
  0x3e   : > { %p416_p5 = pneg %p415_p4  ;;  %p422_p9 = por %p421_p3, %p420_p7 }
  0x40   : > { %p423_p11 = pnand %p422_p9, %p416_p5 }
  0x42   : > { %426 = shalt.err (!%p423_p11)
}
  0x43   : > { %328 = dma.hbm_to_vmem [thread:$0]  (!%p540_p8), %s583_s5, 32, %s141_s30, %s130_s24  }
  0x44   : > { %p647_p6 = scmp.ne.s32.totalorder %s646_s23, 0 }
  0x45   : > { %s151_s21 = sand.u32 (!%p647_p6), 1, %s457_s10   ;;  %p648_p10 = scmp.ne.s32.totalorder (!%p647_p6), %s644_s18, 0 }
  0x46   : > { %149 = sbr.rel (%p647_p6) target bundleno = 256 (0x100), region = 28  ;;  %s312_s22 = sshll.u32 (!%p647_p6), %s151_s21, 3 }
  0x47   : > { %s152_s25 = scalar_lea.sflag (!%p647_p6), [#allocation3], %s151_s21  ;;  %s155_s29 = scalar_lea.vmem (!%p647_p6), [#allocation2], %s312_s22 }
  0x4d   : > { %444 = dma.done.wait (%p648_p10), %s152_s25, 128  }
  0x4e   : > { %446 = vsyncadd (%p648_p10), %s152_s25, 4294967168  ;;  %s313_s3 = sshll.u32 %s151_s21, 1  ;;  %s161_s4 = scalar_lea.sflag [#allocation5], %s151_s21 }
  0x4f   : > { %s164_s27 = scalar_lea.vmem [#allocation4], %s313_s3 }
  0x50   : > { %448 = dma.done.wait (%p648_p10), %s161_s4, 32  }
  0x51   : > { %450 = vsyncadd (%p648_p10), %s161_s4, 4294967264  ;;  %p314_p7 = scmp.ne.s32.totalorder %s304_s13, 0 }
  0x52   : > { %vm189_vm0 = vcmask (!%p314_p7), 3072   ;;  %v472_v0 = vmov (!%p314_p7), 0.0  }
  0x53   : > { %188 = sbr.rel (%p314_p7) target bundleno = 90 (0x5a), region = 40  ;;  %190 = vst.msk [vmem:[%s642_s2] sm:$0xf] (!%p314_p7), %vm189_vm0, %v472_v0 }
  0x5a PF: > { %v191_v1 = vld [vmem:[%s164_s27] sm:$0x3]  ;;  %v200_v2 = vlaneseq  ;;  %v473_v4 = vmov 1966171168   ;;  %v194_v14 = vld [vmem:[%s155_s29] sm:$0xf] }
  0x5b   : > { %v192_v3 = vmul.f32 2.0, %v191_v1  ;;  %v198_v5 = vunpack.c.l.s4 %v473_v4  ;;  %v195_v17 = vld [vmem:[%s155_s29 + $0x4] sm:$0xf]  ;;  %vm231_vm1 = vcmask 1043456   ;;  %v235_v25 = vld [vmem:[%s642_s2] sm:$0xf] }
  0x5c   : > { %v201_v6 = vshrl.u32 %v200_v2, 7  ;;  %vm240_vm2 = vcmask 3072  }
  0x5d   : > { %v315_v7 = vadd.f32 -1.0, %v192_v3  ;;  %v199_v8 = vunpack.c.0.s8 %v198_v5 }
  0x5e   : > { %v221_v11 = vsub.s32 0, %v201_v6 }
  0x5f   : > { %v202_v9 = vsub.s32 %v199_v8, %v201_v6 }
  0x61   : > { %v203_v10 = vrot.slane %v315_v7, %v202_v9 }
  0x63   : > { %v204_v12 = vcombine.high %v203_v10, %v203_v10  ;;  %v211_v13 = vrot.slane %v203_v10, %v202_v9 }
  0x65   : > { %v218_v15 = vrot.slane %v204_v12, %v202_v9  ;;  %v222_v16 = vrot.slane %v211_v13, %v221_v11 }
  0x67   : > { %v226_v18 = vrot.slane %v218_v15, %v221_v11  ;;  %v229_v19 = vmul.f32 %v222_v16, %v194_v14 }
  0x69   : > { %v230_v20 = vmul.f32 %v226_v18, %v195_v17  ;;  %v232_v21 = vsel %vm231_vm1, %v229_v19, 0.0 }
  0x6b   : > { %v233_v22 = vsel %vm231_vm1, %v230_v20, 0.0 }
  0x6c   : > { %v234_v23 = vadd.f32 %v233_v22, %v232_v21 }
  0x6e   : > { %v236_v24 = vsel %vm231_vm1, %v234_v23, 0.0 }
  0x6f   : > { %237 = vadd.xlane.f32.xlu0 %v236_v24 }
  0xfc   : > { %v238_v26 = vpop.xlane.xlu0 %237 }
  0xfd   : > { %v239_v27 = vadd.f32 %v238_v26, %v235_v25 }
  0xff   : > { %241 = vst.msk [vmem:[%s642_s2] sm:$0xf] %vm240_vm2, %v239_v27 }
 0x100 PF: > { %p15_p8 = scmp.ge.s32.totalorder %s509_s14, 4   ;;  %s649_s9 = smov %s457_s10 }
 0x101   : > { %s650_s10 = smov %s461_s11  ;;  %s651_s11 = smov %s519_s17 }
 0x102   : > { %s652_s12 = smov %s509_s14  ;;  %17 = sbr.rel (!%p15_p8) target bundleno = 5 (0x5), region = 81 }
 0x109   :  { %253 = vsyncpa [#allocation3], 1 }
 0x10a   :  { %255 = vsyncpa [#allocation3 + $0x1], 1 }
 0x10b   :  { %256 = vsyncpa [#allocation5], 1 }
 0x10c   :  { %258 = vsyncpa [#allocation5 + $0x1], 1 }

</bundles_post_ra>
